<compile_context>
chip_gen: v5e
topology: v5e:2x2
jax: 0.10.0
libtpu: 0.0.40
codegen_flags: <defaults>
</compile_context>

<pallas_src>
import functools

import jax
import jax.numpy as jnp
from jax.experimental import pallas as pl
from jax.experimental.pallas import tpu as pltpu

_LANE = 128
_SUBLANE = 8
_TARGET_BLOCK_BYTES = 2 << 20  # ~2 MiB per input block (>=85% of HBM roofline)


def _cdiv(a: int, b: int) -> int:
    return -(-a // b)


def _round_up(a: int, m: int) -> int:
    return _cdiv(a, m) * m


def _pow_p(x, p: int):
    """|x| ** p specialized on p (skip abs for even p, no pow for p<=2)."""
    if p == 1:
        return jnp.abs(x)
    if p == 2:
        return x * x
    if p % 2 == 0:
        return (x * x) ** (p // 2)
    return jnp.abs(x) ** p


def _accum_tile(x_ref, acc_ref, *, p: int, aw: int, valid: int):
    """Fold sum_j |x[:, j]|^p of one (bt, tn) tile into acc_ref (bt, aw).

    The accumulator is loaded ONCE per tile into a value, lane-chunks of the
    input are added into it with pure VPU work, and it is stored ONCE.
    `valid` (static) is the number of in-bounds lanes of this tile: chunks
    entirely past it are skipped at trace time; the single partially-valid
    chunk gets a static lane mask.
    """
    tn = x_ref.shape[-1]
    acc = acc_ref[...]
    for c in range(tn // aw):
        lo = c * aw
        lim = min(valid - lo, aw)
        if lim <= 0:
            continue  # chunk entirely out of bounds -> contributes 0
        xb = x_ref[:, lo:lo + aw].astype(jnp.float32)
        if lim < aw:
            col = jax.lax.broadcasted_iota(jnp.int32, (1, aw), 1)
            xb = jnp.where(col < lim, xb, 0.0)
        acc = acc + _pow_p(xb, p)
    acc_ref[...] = acc


def _lpnorm_kernel(x_ref, o_ref, acc_ref, *, p: int, rem: int, aw: int):
    """Grid: (batch tiles [parallel], reduction tiles [arbitrary])."""
    j = pl.program_id(1)
    last_j = pl.num_programs(1) - 1
    tn = x_ref.shape[-1]

    @pl.when(j == 0)
    def _init():
        acc_ref[...] = jnp.zeros_like(acc_ref)

    if rem == 0:
        _accum_tile(x_ref, acc_ref, p=p, aw=aw, valid=tn)
    else:
        # Tail mask only on the last reduction tile; full tiles run the
        # mask-free path.
        @pl.when(j != last_j)
        def _full_tiles():
            _accum_tile(x_ref, acc_ref, p=p, aw=aw, valid=tn)

        @pl.when(j == last_j)
        def _tail_tile():
            _accum_tile(x_ref, acc_ref, p=p, aw=aw, valid=rem)

    @pl.when(j == last_j)
    def _finalize():
        s = jnp.sum(acc_ref[...], axis=1, keepdims=True)  # single XLU reduce
        if p == 1:
            norm = s
        elif p == 2:
            norm = jnp.sqrt(s)
        else:
            norm = s ** (1.0 / p)
        o_ref[...] = norm.astype(o_ref.dtype)


def lp_norm(x: jax.Array, p: int, *, tile_n: int | None = None,
            tile_b: int | None = None) -> jax.Array:
    """Per-batch L_p norm: (sum over non-batch dims of |x|^p) ** (1/p)."""
    if p < 1:
        # Same check & message as the reference PyTorch module.
        raise ValueError("p must be greater than 1")
    p = int(p)

    b = x.shape[0]
    x2 = x.reshape(b, -1) if x.ndim > 1 else x.reshape(b, 1)
    n = x2.shape[1]
    itemsize = x2.dtype.itemsize
    # Rows per vreg for this dtype: 8 (f32), 16 (bf16), 32 (int8/fp8).
    pack = max(_SUBLANE, 32 // max(itemsize, 1))

    # ---- reduction tile (lane axis): multiple of 128, or the whole of n. ----
    if tile_n is not None:
        tn = int(tile_n)
        if tn != n and (tn <= 0 or tn % _LANE != 0 or tn > n):
            raise ValueError(
                "tile_n must equal n or be a positive multiple of 128 <= n")
    elif n <= _LANE:
        tn = n
    else:
        n_lane = (n // _LANE) * _LANE  # ragged tail is masked in-kernel
        tn_want = max(_LANE,
                      (_TARGET_BLOCK_BYTES // (pack * itemsize)) // _LANE * _LANE)
        tn = min(tn_want, n_lane)

    # ---- batch tile (sublane axis), sized jointly with tn so that the
    #      per-step block lands near the ~2 MiB target. ----
    if tile_b is not None:
        bt = int(tile_b)
        if bt != b and (bt <= 0 or bt % _SUBLANE != 0):
            raise ValueError("tile_b must equal b or be a multiple of 8")
    else:
        bt = min(b, _round_up(_cdiv(_TARGET_BLOCK_BYTES, tn * itemsize), pack))
        if b <= pack:
            bt = b
        elif _cdiv(b, bt) < 2:
            # Prefer >= 2 batch tiles so the "parallel" axis can shard across
            # v7x's 2 TensorCores.
            bt = min(b, max(pack, _round_up(_cdiv(b, 2), pack)))

    # ---- accumulator width: largest 128-multiple chunk dividing tn that keeps
    #      the per-tile accumulator value (roughly) vreg resident. ----
    aw = tn
    for cand in (2048, 1024, 512, 256, 128):
        if tn % cand == 0 and bt * cand * 4 <= (64 << 10):
            aw = cand
            break

    rem = n % tn
    grid = (_cdiv(b, bt), _cdiv(n, tn))

    # VMEM: double-buffered input block + f32 accumulator + output + headroom.
    vmem_need = 2 * bt * tn * itemsize + bt * max(aw, _LANE) * 4 + 2 * bt * 4
    vmem_limit = int(min(max(vmem_need + (4 << 20), 16 << 20), 48 << 20))

    out = pl.pallas_call(
        functools.partial(_lpnorm_kernel, p=p, rem=rem, aw=aw),
        out_shape=jax.ShapeDtypeStruct((b, 1), x.dtype),
        grid_spec=pltpu.PrefetchScalarGridSpec(
            num_scalar_prefetch=0,
            grid=grid,
            in_specs=[pl.BlockSpec((bt, tn), lambda i, j: (i, j))],
            out_specs=pl.BlockSpec((bt, 1), lambda i, j: (i, 0)),
            scratch_shapes=[pltpu.VMEM((bt, aw), jnp.float32)],
        ),
        compiler_params=pltpu.CompilerParams(
            dimension_semantics=("parallel", "arbitrary"),
            vmem_limit_bytes=vmem_limit,
        ),
    )(x2)
    return out.reshape(b)


if __name__ == "__main__":
    # 1) Primary case: NCHW input, odd p (p = 3).
    x = jax.random.normal(jax.random.PRNGKey(0), (2, 4, 16, 16), dtype=jnp.float32)
    r1 = lp_norm(x, 3)
    jax.block_until_ready(r1)
    ref1 = (jnp.abs(x) ** 3).sum(axis=(1, 2, 3)) ** (1.0 / 3)
    assert r1.shape == (2,)
    assert jnp.allclose(r1, ref1, rtol=1e-5, atol=1e-5)

    # 2) Ragged reduction axis (last-tile mask, grid_n > 1) + p == 2 path.
    y = jax.random.normal(jax.random.PRNGKey(1), (3, 5, 7, 9), dtype=jnp.float32)
    r2 = lp_norm(y, 2)
    jax.block_until_ready(r2)
    ref2 = jnp.sqrt((y * y).sum(axis=(1, 2, 3)))
    assert jnp.allclose(r2, ref2, rtol=1e-5, atol=1e-5)

    # 3) Ragged batch axis (batch tiling + masked writeback) + p == 1 path.
    z = jax.random.normal(jax.random.PRNGKey(2), (10, 4, 8, 8), dtype=jnp.float32)
    r3 = lp_norm(z, 1)
    jax.block_until_ready(r3)
    ref3 = jnp.abs(z).sum(axis=(1, 2, 3))
    assert jnp.allclose(r3, ref3, rtol=1e-5, atol=1e-5)

    # 4) Larger reduction (multi-chunk accumulator fold) + even p (p = 4).
    w = jax.random.normal(jax.random.PRNGKey(3), (2, 8, 32, 32), dtype=jnp.float32)
    r4 = lp_norm(w, 4)
    jax.block_until_ready(r4)
    ref4 = ((jnp.abs(w) ** 4).sum(axis=(1, 2, 3))) ** 0.25
    assert jnp.allclose(r4, ref4, rtol=1e-5, atol=1e-5)

    # 5) Ragged N with a multi-chunk tile (exercises static chunk-skip in the
    #    masked tail path).
    v = jax.random.normal(jax.random.PRNGKey(4), (2, 4, 34, 34), dtype=jnp.float32)
    r5 = lp_norm(v, 3)
    jax.block_until_ready(r5)
    ref5 = (jnp.abs(v) ** 3).sum(axis=(1, 2, 3)) ** (1.0 / 3)
    assert jnp.allclose(r5, ref5, rtol=1e-5, atol=1e-5)

    print("KERNEL_OK")
</pallas_src>

<mosaic_0001>
module attributes {stable_mosaic.version = 11 : i64} {
  func.func @_lpnorm_kernel(%arg0: i32, %arg1: i32, %arg2: memref<2x1024xf32, #tpu.memory_space<vmem>>, %arg3: memref<2x1xf32, #tpu.memory_space<vmem>>, %arg4: memref<2x1024xf32, #tpu.memory_space<vmem>>) attributes {dimension_semantics = [#tpu.dimension_semantics<parallel>, #tpu.dimension_semantics<arbitrary>], iteration_bounds = array<i64: 1, 1>, scalar_prefetch = 0 : i64, scratch_operands = 1 : i64, tpu.core_type = #tpu.core_type<tc>, window_params = [{transform_indices = @transform_0, window_bounds = array<i64: 2, 1024>}, {transform_indices = @transform_1, window_bounds = array<i64: 2, 1>}]} {
    %c0_i32 = arith.constant 0 : i32
    %0 = arith.cmpi eq, %arg1, %c0_i32 : i32
    %1 = arith.extui %0 : i1 to i32
    %c0_i32_0 = arith.constant 0 : i32
    %2 = arith.cmpi ne, %1, %c0_i32_0 : i32
    scf.if %2 {
      %cst = arith.constant 0.000000e+00 : f32
      %13 = vector.broadcast %cst : f32 to vector<2x1024xf32>
      %c0_8 = arith.constant 0 : index
      %c0_9 = arith.constant 0 : index
      %14 = vector.load %arg4[%c0_8, %c0_9] : memref<2x1024xf32, #tpu.memory_space<vmem>>, vector<2x1024xf32>
      tpu.vector_store %arg4[%c0_8, %c0_9], %13 {strides = array<i32>} : memref<2x1024xf32, #tpu.memory_space<vmem>>, vector<2x1024xf32>,
    } else {
    }
    %c0 = arith.constant 0 : index
    %c0_1 = arith.constant 0 : index
    %3 = vector.load %arg4[%c0, %c0_1] : memref<2x1024xf32, #tpu.memory_space<vmem>>, vector<2x1024xf32>
    %c0_2 = arith.constant 0 : index
    %c0_3 = arith.constant 0 : index
    %4 = vector.load %arg2[%c0_2, %c0_3] : memref<2x1024xf32, #tpu.memory_space<vmem>>, vector<2x1024xf32>
    %5 = math.absf %4 : vector<2x1024xf32>
    %6 = arith.mulf %5, %5 : vector<2x1024xf32>
    %7 = arith.mulf %5, %6 : vector<2x1024xf32>
    %8 = arith.addf %3, %7 : vector<2x1024xf32>
    %c0_4 = arith.constant 0 : index
    %c0_5 = arith.constant 0 : index
    %9 = vector.load %arg4[%c0_4, %c0_5] : memref<2x1024xf32, #tpu.memory_space<vmem>>, vector<2x1024xf32>
    tpu.vector_store %arg4[%c0_4, %c0_5], %8 {strides = array<i32>} : memref<2x1024xf32, #tpu.memory_space<vmem>>, vector<2x1024xf32>,
    %c0_i32_6 = arith.constant 0 : i32
    %10 = arith.cmpi eq, %arg1, %c0_i32_6 : i32
    %11 = arith.extui %10 : i1 to i32
    %c0_i32_7 = arith.constant 0 : i32
    %12 = arith.cmpi ne, %11, %c0_i32_7 : i32
    scf.if %12 {
      %c0_8 = arith.constant 0 : index
      %c0_9 = arith.constant 0 : index
      %13 = vector.load %arg4[%c0_8, %c0_9] : memref<2x1024xf32, #tpu.memory_space<vmem>>, vector<2x1024xf32>
      %cst = arith.constant dense<0.000000e+00> : vector<2xf32>
      %14 = vector.multi_reduction <add>, %13, %cst [1] : vector<2x1024xf32> to vector<2xf32>
      %15 = vector.shape_cast %14 : vector<2xf32> to vector<2x1xf32>
      %cst_10 = arith.constant 0.333333343 : f32
      %16 = vector.broadcast %cst_10 : f32 to vector<2x1xf32>
      %17 = math.powf %15, %16 : vector<2x1xf32>
      %c0_11 = arith.constant 0 : index
      %c0_12 = arith.constant 0 : index
      %18 = vector.load %arg3[%c0_11, %c0_12] : memref<2x1xf32, #tpu.memory_space<vmem>>, vector<2x1xf32>
      tpu.vector_store %arg3[%c0_11, %c0_12], %17 {strides = array<i32>} : memref<2x1xf32, #tpu.memory_space<vmem>>, vector<2x1xf32>,
    } else {
    }
    return
  }
  func.func @transform_0(%arg0: i32, %arg1: i32) -> (i32, i32) {
    %c0_i32 = arith.constant 0 : i32
    return %arg0, %arg1 : i32, i32
  }
  func.func @transform_1(%arg0: i32, %arg1: i32) -> (i32, i32) {
    %c0_i32 = arith.constant 0 : i32
    %c0_i32_0 = arith.constant 0 : i32
    return %arg0, %c0_i32 : i32, i32
  }
}

</mosaic_0001>

<bundles_post_ra>
// kernel: tpu_custom_call.1
= control target key start
LH: loop header
LB: loop body
LE: loop exit
PB: predicated region body
PF: predicated region fallthrough
CT: control target
= control target key end

     0   :  { %6 = vsyncpa [#allocation4], 0  ;;  %s149_s9 = smov [#allocation3]   ;;  %s174_s0 = inlined_call_operand.hbm [shape: f32[2,1024], index: 0, kind: input, shape index: {}]   ;;  %s175_s1 = inlined_call_operand.vmem [shape: f32[2,1], index: 1, kind: output, shape index: {}]  }
   0x1   :  { %s12_s8 = sshll.u32 %s174_s0, 4  ;;  %s14_s10 = sshll.u32 %s149_s9, 4  ;;  %s13_s8 = int_to_ptr.hbm [resolvable:$true] %s12_s8  ;;  %s15_s10 = int_to_ptr.vmem [resolvable:$true] %s14_s10 }
   0x2   :  { %17 = dma.hbm_to_vmem [thread:$0]  %s13_s8, 256, %s15_s10, [#allocation4]  }
   0x3   :  { %147 = dma.done.wait [#allocation4], 256  }
   0x4   :  { %148 = vsyncadd [#allocation4], 4294967040  ;;  %v30_v0 = vld [vmem:[#allocation3] sm:$0xff]  ;;  %v31_v1 = vld [vmem:[#allocation3 + $0x8] sm:$0xff]  ;;  %vm68_vm0 = vcmask 1041408   ;;  %vm87_vm5 = vcmask 1024  }
   0x5   :  { %v32_v2 = vand.u32 2147483647, %v30_v0  ;;  %v33_v3 = vand.u32 2147483647, %v31_v1 }
   0x7   :  { %v34_v4 = vmul.f32 %v32_v2, %v32_v2  ;;  %v35_v5 = vmul.f32 %v33_v3, %v33_v3 }
   0x9   :  { %v36_v6 = vmul.f32 %v34_v4, %v32_v2  ;;  %v37_v7 = vmul.f32 %v35_v5, %v33_v3 }
   0xb   :  { %49 = vst [vmem:[#allocation1] ss:$4 sm:$0xff] %v36_v6 }
   0xc   :  { %51 = vst [vmem:[#allocation1 + $0x20] ss:$4 sm:$0xff] %v37_v7 }
  0x12   :  { %v52_v8 = vld.sshfl [vmem:[#allocation1] sm:$0xff pattern:$0x73625140]  ;;  %v53_v9 = vld.sshfl [vmem:[#allocation1 + $0x8] sm:$0xff pattern:$0x73625140] }
  0x13   :  { %v54_v10 = vld.sshfl [vmem:[#allocation1 + $0x10] sm:$0xff pattern:$0x73625140]  ;;  %v55_v11 = vld.sshfl [vmem:[#allocation1 + $0x18] sm:$0xff pattern:$0x73625140] }
  0x14   :  { %v69_v12 = vsel %vm68_vm0, %v52_v8, 0.0  ;;  %v70_v13 = vsel %vm68_vm0, %v53_v9, 0.0  ;;  %v72_v14 = vsel %vm68_vm0, %v54_v10, 0.0  ;;  %v56_v15 = vld.sshfl [vmem:[#allocation1 + $0x20] sm:$0xff pattern:$0x73625140] }
  0x15   :  { %v71_v16 = vadd.f32 %v70_v13, %v69_v12  ;;  %v74_v17 = vsel %vm68_vm0, %v55_v11, 0.0  ;;  %v57_v18 = vld.sshfl [vmem:[#allocation1 + $0x28] sm:$0xff pattern:$0x73625140]  ;;  %v76_v20 = vsel %vm68_vm0, %v56_v15, 0.0 }
  0x16   :  { %v58_v21 = vld.sshfl [vmem:[#allocation1 + $0x30] sm:$0xff pattern:$0x73625140]  ;;  %v78_v23 = vsel %vm68_vm0, %v57_v18, 0.0 }
  0x17   :  { %v73_v19 = vadd.f32 %v72_v14, %v71_v16  ;;  %v59_v24 = vld.sshfl [vmem:[#allocation1 + $0x38] sm:$0xff pattern:$0x73625140]  ;;  %v80_v26 = vsel %vm68_vm0, %v58_v21, 0.0 }
  0x18   :  { %v82_v28 = vsel %vm68_vm0, %v59_v24, 0.0 }
  0x19   :  { %v75_v22 = vadd.f32 %v74_v17, %v73_v19 }
  0x1b   :  { %v77_v25 = vadd.f32 %v76_v20, %v75_v22 }
  0x1d   :  { %v79_v27 = vadd.f32 %v78_v23, %v77_v25 }
  0x1f   :  { %v81_v29 = vadd.f32 %v80_v26, %v79_v27 }
  0x21   :  { %v83_v30 = vadd.f32 %v82_v28, %v81_v29 }
  0x23   :  { %84 = vadd.xlane.f32.xlu0 %v83_v30 }
  0x96   :  { %v85_v31 = vpop.xlane.xlu0 %84 }
  0x97   :  { %v96_v32 = vand.u32 2147483647, %v85_v31  ;;  %v113_v44 = vand.u32 2147483648, %v85_v31  ;;  %vm95_vm3 = vcmp.lt.f32.partialorder %v85_v31, 0.0  ;;  %vm94_vm4 = vcmp.eq.f32.partialorder %v85_v31, 0.0 }
  0x99   :  { %119 = vlog2.f32 %v96_v32  ;;  %vm110_vm1 = vweird.f32 %v96_v32  ;;  %vm112_vm2 = vcmp.eq.f32.partialorder %v96_v32, 0.0  ;;  %vm97_vm6 = vcmp.eq.f32.partialorder %v96_v32, inf }
  0x9f   :  { %v120_v33 = vpop.eup %119 }
  0xa0   :  { %v100_v34 = vmul.f32 -0.33333334, %v120_v33 }
  0xa2   :  { %121 = vpow2.f32 %v100_v34 }
  0xa8   :  { %v122_v35 = vpop.eup %121 }
  0xa9   :  { %v102_v36 = vmul.f32 %v122_v35, %v122_v35 }
  0xab   :  { %v103_v37 = vmul.f32 %v102_v36, %v96_v32 }
  0xad   :  { %v104_v38 = vmul.f32 %v103_v37, %v102_v36 }
  0xaf   :  { %v105_v39 = vsub.f32 %v104_v38, %v122_v35 }
  0xb1   :  { %v106_v40 = vmul.f32 -0.33333334, %v105_v39 }
  0xb3   :  { %v107_v41 = vadd.f32 %v122_v35, %v106_v40 }
  0xb5   :  { %v108_v42 = vmul.f32 %v107_v41, %v85_v31 }
  0xb7   :  { %v109_v43 = vmul.f32 %v108_v42, %v107_v41 }
  0xb9   :  { %v111_v45 = vsel %vm110_vm1, %v85_v31, %v109_v43 }
  0xba   :  { %v114_v46 = vsel %vm112_vm2, %v113_v44, %v111_v45 }
  0xbb   :  { %v115_v47 = vsel %vm95_vm3, nan, %v114_v46 }
  0xbc   :  { %v116_v48 = vsel %vm94_vm4, 0.0, %v115_v47 }
  0xbd   :  { %v117_v49 = vsel %vm97_vm6, inf, %v116_v48 }
  0xbe   :  { %88 = vst.msk [vmem:[%s175_s1] sm:$0x3] %vm87_vm5, %v117_v49 }
  0xbf   :  { %93 = vsyncpa [#allocation4], 1 }

</bundles_post_ra>
